<compile_context>
chip_gen: v6e
topology: v6e:2x2x1
jax: 0.10.0
libtpu: 0.0.40
codegen_flags: <defaults>
</compile_context>

<pallas_src>
import jax
import jax.numpy as jnp
import numpy as np
from jax import lax
from jax.experimental import pallas as pl
from jax.experimental.pallas import tpu as pltpu

EPS = 1e-5  # PyTorch BatchNorm2d default eps


# ----------------------------------------------------------------------------
# small helpers
# ----------------------------------------------------------------------------
def _round_up(x, m):
    return (x + m - 1) // m * m


def _tpu_vmem_bytes():
    """Physical VMEM bytes of the local TPU generation (conservative fallback)."""
    try:
        return int(pltpu.get_tpu_info().vmem_capacity_bytes)
    except Exception:
        return 64 * 1024 * 1024  # assume v7x (smallest) if query unavailable


_VMEM_BYTES = _tpu_vmem_bytes()
# leave headroom under the physical capacity; bigger budget on 128 MiB chips
_VMEM_LIMIT = int(min(_VMEM_BYTES * 3 // 4, 112 * 1024 * 1024))
_TILE_M_CAP = 1024 if _VMEM_BYTES >= 100 * 1024 * 1024 else 512
_RESIDENT_W_BUDGET = 8 * 1024 * 1024  # bf16 weight slab must fit this to stay resident


def _pick_tile_m(P, cap):
    """TILE_M: multiple of 128, <= cap, minimising padding, >=2 tiles when possible
    (so both v7x TensorCores get work along the 'parallel' M axis)."""
    PP0 = _round_up(P, 128)
    if PP0 <= 128:
        return PP0, PP0
    cap = max(128, min(cap, PP0 // 2))          # guarantee n_m >= 2
    best_t, best_pad = 128, _round_up(P, 128)
    t = 256
    while t <= cap:
        pad = _round_up(P, t)
        if pad < best_pad or (pad == best_pad and t > best_t):
            best_t, best_pad = t, pad
        t += 128
    return best_t, best_pad


def _pad_cast(a, shape, dtype):
    """Cast and zero-pad only if needed (avoid extra HBM copies when aligned)."""
    a = a.astype(dtype)
    if tuple(a.shape) == tuple(shape):
        return a
    out = jnp.zeros(shape, dtype)
    return out.at[: a.shape[0], : a.shape[1]].set(a)


# ----------------------------------------------------------------------------
# Pallas kernels
#   resident-weight path : one full-depth dot per M tile, epilogue fused.
#   K-tiled fallback     : f32 accumulator scratch, pl.when init / epilogue.
# ReLU is never combined with a residual (module: conv1+bn1 -> relu, then
# conv2+bn2 + residual with NO post-add activation).
# ----------------------------------------------------------------------------
def _make_kernel_resident(relu, has_residual):
    if has_residual:
        def kernel(x_ref, w_ref, b_ref, r_ref, o_ref):
            y = jnp.dot(x_ref[...], w_ref[...], preferred_element_type=jnp.float32)
            y = y + b_ref[...] + r_ref[...].astype(jnp.float32)
            o_ref[...] = y.astype(o_ref.dtype)
    else:
        def kernel(x_ref, w_ref, b_ref, o_ref):
            y = jnp.dot(x_ref[...], w_ref[...], preferred_element_type=jnp.float32)
            y = y + b_ref[...]
            if relu:
                y = jnp.maximum(y, 0.0)
            o_ref[...] = y.astype(o_ref.dtype)
    return kernel


def _make_kernel_ktiled(relu, has_residual):
    if has_residual:
        def kernel(x_ref, w_ref, b_ref, r_ref, o_ref, acc_ref):
            k = pl.program_id(1)

            @pl.when(k == 0)
            def _init():
                acc_ref[...] = jnp.zeros_like(acc_ref)

            acc_ref[...] += jnp.dot(x_ref[...], w_ref[...],
                                    preferred_element_type=jnp.float32)

            @pl.when(k == pl.num_programs(1) - 1)
            def _store():
                y = acc_ref[...] + b_ref[...] + r_ref[...].astype(jnp.float32)
                o_ref[...] = y.astype(o_ref.dtype)
    else:
        def kernel(x_ref, w_ref, b_ref, o_ref, acc_ref):
            k = pl.program_id(1)

            @pl.when(k == 0)
            def _init():
                acc_ref[...] = jnp.zeros_like(acc_ref)

            acc_ref[...] += jnp.dot(x_ref[...], w_ref[...],
                                    preferred_element_type=jnp.float32)

            @pl.when(k == pl.num_programs(1) - 1)
            def _store():
                y = acc_ref[...] + b_ref[...]
                if relu:
                    y = jnp.maximum(y, 0.0)
                o_ref[...] = y.astype(o_ref.dtype)
    return kernel


def fused_matmul_bias_pallas(patches, w_folded, bias, *, relu=False,
                             residual=None, out_dtype=jnp.bfloat16):
    """out = relu?(patches @ w_folded + bias) [+ residual]   (BN already folded).

    patches : (P, K)     any float dtype (cast to bf16 for the MXU)
    w_folded: (K, Cout)  f32 weights with BN scale folded in
    bias    : (Cout,)    f32
    residual: (P, Cout)  optional, added in the epilogue (read as bf16)
    """
    assert not (relu and residual is not None)

    P, K = patches.shape
    Cout = w_folded.shape[1]

    COUTP = _round_up(Cout, 128)                 # lane-dense output
    KP = _round_up(K, 128)
    out_bytes = jnp.dtype(out_dtype).itemsize
    has_res = residual is not None

    w_bytes = KP * COUTP * 2
    resident = w_bytes <= _RESIDENT_W_BUDGET

    # M tile cap: generation cap AND leave VMEM room for double-buffered x tiles
    # (and the resident weight slab).
    x_budget = max(_VMEM_LIMIT // 3, 4 * 1024 * 1024)
    cap_from_vmem = max(128, (x_budget // (2 * max(KP, 512) * 2)) // 128 * 128)
    TILE_M, PP = _pick_tile_m(P, min(_TILE_M_CAP, cap_from_vmem))
    n_m = PP // TILE_M

    b_f = bias.astype(jnp.float32)
    b = _pad_cast(b_f[None, :], (1, COUTP), jnp.float32)

    flops = 2 * PP * KP * COUTP
    bytes_accessed = PP * KP * 2 + KP * COUTP * 2 + COUTP * 4 + PP * COUTP * out_bytes
    if has_res:
        bytes_accessed += PP * COUTP * 2

    if resident:
        x = _pad_cast(patches, (PP, KP), jnp.bfloat16)
        w = _pad_cast(w_folded, (KP, COUTP), jnp.bfloat16)
        inputs = [x, w, b]
        in_specs = [
            pl.BlockSpec((TILE_M, KP), lambda i: (i, 0)),
            pl.BlockSpec((KP, COUTP), lambda i: (0, 0)),   # resident across all M tiles
            pl.BlockSpec((1, COUTP), lambda i: (0, 0)),
        ]
        if has_res:
            inputs.append(_pad_cast(residual, (PP, COUTP), jnp.bfloat16))
            in_specs.append(pl.BlockSpec((TILE_M, COUTP), lambda i: (i, 0)))

        out = pl.pallas_call(
            _make_kernel_resident(relu, has_res),
            grid=(n_m,),
            in_specs=in_specs,
            out_specs=pl.BlockSpec((TILE_M, COUTP), lambda i: (i, 0)),
            out_shape=jax.ShapeDtypeStruct((PP, COUTP), out_dtype),
            compiler_params=pltpu.CompilerParams(
                dimension_semantics=("parallel",),
                vmem_limit_bytes=_VMEM_LIMIT,
            ),
            cost_estimate=pl.CostEstimate(
                flops=int(flops), transcendentals=0,
                bytes_accessed=int(bytes_accessed)),
        )(*inputs)
    else:
        # K-tiled fallback (weight slab too large to keep resident).
        TILE_K = 512                              # deep contraction for 256x256 MXU
        KP = _round_up(K, TILE_K)
        n_k = KP // TILE_K
        x = _pad_cast(patches, (PP, KP), jnp.bfloat16)
        w = _pad_cast(w_folded, (KP, COUTP), jnp.bfloat16)
        inputs = [x, w, b]
        in_specs = [
            pl.BlockSpec((TILE_M, TILE_K), lambda i, k: (i, k)),
            pl.BlockSpec((TILE_K, COUTP), lambda i, k: (k, 0)),
            pl.BlockSpec((1, COUTP), lambda i, k: (0, 0)),
        ]
        if has_res:
            inputs.append(_pad_cast(residual, (PP, COUTP), jnp.bfloat16))
            in_specs.append(pl.BlockSpec((TILE_M, COUTP), lambda i, k: (i, 0)))

        out = pl.pallas_call(
            _make_kernel_ktiled(relu, has_res),
            grid=(n_m, n_k),
            in_specs=in_specs,
            out_specs=pl.BlockSpec((TILE_M, COUTP), lambda i, k: (i, 0)),
            out_shape=jax.ShapeDtypeStruct((PP, COUTP), out_dtype),
            scratch_shapes=[pltpu.VMEM((TILE_M, COUTP), jnp.float32)],
            compiler_params=pltpu.CompilerParams(
                dimension_semantics=("parallel", "arbitrary"),
                vmem_limit_bytes=_VMEM_LIMIT,
            ),
            cost_estimate=pl.CostEstimate(
                flops=int(flops), transcendentals=0,
                bytes_accessed=int(bytes_accessed)),
        )(*inputs)

    return out[:P, :Cout]


# ----------------------------------------------------------------------------
# Plain-JAX glue: im2col patch extraction (bf16), BN fusion
# ----------------------------------------------------------------------------
def im2col(x_nhwc, kh, kw, stride, pad):
    N, H, W, C = x_nhwc.shape
    xp = jnp.pad(x_nhwc, ((0, 0), (pad, pad), (pad, pad), (0, 0))).astype(jnp.bfloat16)
    Hp, Wp = H + 2 * pad, W + 2 * pad
    Ho = (Hp - kh) // stride + 1
    Wo = (Wp - kw) // stride + 1
    taps = []
    for ky in range(kh):
        for kx in range(kw):
            taps.append(xp[:, ky:ky + stride * Ho:stride, kx:kx + stride * Wo:stride, :])
    patches = jnp.concatenate(taps, axis=-1)  # (N, Ho, Wo, kh*kw*C), tap-major order
    return patches.reshape(N * Ho * Wo, kh * kw * C), (N, Ho, Wo)


def fuse_bn(bn_params):
    gamma, beta, mean, var = bn_params
    scale = gamma * lax.rsqrt(var + EPS)
    bias = beta - mean * scale
    return scale, bias


# ----------------------------------------------------------------------------
# ResNetBasicBlock / ResNetLayer forward (expansion = 1)
# ----------------------------------------------------------------------------
def resnet_basic_block_forward(x_nhwc, p, *, out_dtype):
    ds = p['downsampling']
    cin = x_nhwc.shape[-1]
    cout = p['w1'].shape[-1]

    # blocks[0]: conv3x3(stride=ds) -> bn -> relu     (one fused kernel, bf16 out)
    patches1, (N, Ho, Wo) = im2col(x_nhwc, 3, 3, ds, 1)
    s1, b1 = fuse_bn(p['bn1'])
    w1f = p['w1'].reshape(9 * cin, cout).astype(jnp.float32) * s1[None, :]
    y1 = fused_matmul_bias_pallas(patches1, w1f, b1, relu=True,
                                  out_dtype=jnp.bfloat16)
    y1 = y1.reshape(N, Ho, Wo, cout)

    # blocks[1]: conv3x3(stride=1) -> bn, plus residual, in ONE kernel.
    #   shortcut (cin != cout): 1x1 conv(stride=ds)+bn folded into the main
    #     matmul by concatenating its patches along K and stacking its folded
    #     weights under the conv2 weights.
    #   identity (cin == cout): residual added in the epilogue (bf16 read).
    # No activation after the add (matches the module).
    patches2, _ = im2col(y1, 3, 3, 1, 1)
    s2, b2 = fuse_bn(p['bn2'])
    w2f = p['w2'].reshape(9 * cout, cout).astype(jnp.float32) * s2[None, :]

    if p['ws'] is not None:
        ss, bs = fuse_bn(p['bns'])
        wsf = p['ws'].reshape(cin, cout).astype(jnp.float32) * ss[None, :]
        sp = x_nhwc[:, ::ds, ::ds, :].reshape(N * Ho * Wo, cin).astype(jnp.bfloat16)
        patches_cat = jnp.concatenate([patches2, sp], axis=-1)      # K = 9*cout + cin
        w_cat = jnp.concatenate([w2f, wsf], axis=0)
        out = fused_matmul_bias_pallas(patches_cat, w_cat, b2 + bs,
                                       out_dtype=out_dtype)
    else:
        residual = x_nhwc.reshape(N * Ho * Wo, cin).astype(jnp.bfloat16)
        out = fused_matmul_bias_pallas(patches2, w2f, b2, residual=residual,
                                       out_dtype=out_dtype)
    return out.reshape(N, Ho, Wo, cout)


def resnet_layer_forward(x_nchw, layer_params):
    x = jnp.transpose(x_nchw, (0, 2, 3, 1))  # NCHW -> NHWC
    blocks = layer_params['blocks']
    for i, p in enumerate(blocks):
        last = (i == len(blocks) - 1)
        # intermediate block outputs stay bf16 (halves HBM traffic); final in f32
        x = resnet_basic_block_forward(
            x, p, out_dtype=jnp.float32 if last else jnp.bfloat16)
    return jnp.transpose(x, (0, 3, 1, 2))    # NHWC -> NCHW


# ----------------------------------------------------------------------------
# Deterministic parameter init (matches nn.Module shapes; synthetic values)
# ----------------------------------------------------------------------------
def _init_bn(key, c):
    k1, k2, k3, k4 = jax.random.split(key, 4)
    gamma = jax.random.uniform(k1, (c,), minval=0.5, maxval=1.5)
    beta = jax.random.normal(k2, (c,)) * 0.1
    mean = jax.random.normal(k3, (c,)) * 0.1
    var = jax.random.uniform(k4, (c,), minval=0.5, maxval=1.5)
    return (gamma, beta, mean, var)


def _init_block(key, cin, cout, downsampling):
    ks = jax.random.split(key, 6)
    p = {
        'downsampling': downsampling,
        'w1': jax.random.normal(ks[0], (3, 3, cin, cout)) * 0.1,   # HWIO
        'bn1': _init_bn(ks[1], cout),
        'w2': jax.random.normal(ks[2], (3, 3, cout, cout)) * 0.1,  # HWIO
        'bn2': _init_bn(ks[3], cout),
        'ws': None,
        'bns': None,
    }
    if cin != cout:  # expansion == 1 -> shortcut iff in_channels != out_channels
        p['ws'] = jax.random.normal(ks[4], (1, 1, cin, cout)) * 0.1
        p['bns'] = _init_bn(ks[5], cout)
    return p


def init_resnet_layer(key, in_channels, out_channels, n=1):
    downsampling = 2 if in_channels != out_channels else 1
    keys = jax.random.split(key, n)
    blocks = [_init_block(keys[0], in_channels, out_channels, downsampling)]
    for i in range(1, n):
        blocks.append(_init_block(keys[i], out_channels, out_channels, 1))
    return {'blocks': blocks}


# ----------------------------------------------------------------------------
# Pure-JAX reference (f32 lax.conv) for correctness verification
# ----------------------------------------------------------------------------
def _ref_block(x, p):
    ds = p['downsampling']

    def conv(x, w, stride, pad):
        return lax.conv_general_dilated(
            x, w, (stride, stride), [(pad, pad), (pad, pad)],
            dimension_numbers=('NHWC', 'HWIO', 'NHWC'))

    def bn(x, bn_p):
        g, b, m, v = bn_p
        return g * (x - m) / jnp.sqrt(v + EPS) + b

    y = jax.nn.relu(bn(conv(x, p['w1'], ds, 1), p['bn1']))
    y = bn(conv(y, p['w2'], 1, 1), p['bn2'])
    if p['ws'] is not None:
        r = bn(conv(x, p['ws'], ds, 0), p['bns'])
    else:
        r = x
    return y + r


def _ref_layer(x_nchw, layer_params):
    x = jnp.transpose(x_nchw, (0, 2, 3, 1))
    for p in layer_params['blocks']:
        x = _ref_block(x, p)
    return jnp.transpose(x, (0, 3, 1, 2))


# ----------------------------------------------------------------------------
if __name__ == "__main__":
    key = jax.random.PRNGKey(0)
    k_params, k_x = jax.random.split(key)

    N, Cin, Cout, H, W = 2, 4, 8, 16, 16
    layer_params = init_resnet_layer(k_params, Cin, Cout, n=2)

    x = jax.random.normal(k_x, (N, Cin, H, W), dtype=jnp.float32)  # NCHW, like PyTorch

    out = resnet_layer_forward(x, layer_params)
    out = jax.block_until_ready(out)

    ref = jax.block_until_ready(_ref_layer(x, layer_params))
    # bf16 MXU inputs / bf16 intermediates with f32 accumulation -> relaxed tolerance
    np.testing.assert_allclose(np.asarray(out), np.asarray(ref), rtol=5e-2, atol=5e-2)
    assert out.shape == (N, Cout, H // 2, W // 2)

    print("KERNEL_OK")
</pallas_src>

<mosaic_0001>
module attributes {stable_mosaic.version = 11 : i64} {
  func.func @kernel(%arg0: i32, %arg1: memref<128x128xbf16, #tpu.memory_space<vmem>>, %arg2: memref<128x128xbf16, #tpu.memory_space<vmem>>, %arg3: memref<1x128xf32, #tpu.memory_space<vmem>>, %arg4: memref<128x128xbf16, #tpu.memory_space<vmem>>) attributes {dimension_semantics = [#tpu.dimension_semantics<parallel>], iteration_bounds = array<i64: 1>, scalar_prefetch = 0 : i64, scratch_operands = 0 : i64, tpu.core_type = #tpu.core_type<tc>, window_params = [{transform_indices = @transform_0, window_bounds = array<i64: 128, 128>}, {pipeline_mode = #tpu.pipeline_mode<synchronous>, transform_indices = @transform_1, window_bounds = array<i64: 128, 128>}, {pipeline_mode = #tpu.pipeline_mode<synchronous>, transform_indices = @transform_2, window_bounds = array<i64: 1, 128>}, {transform_indices = @transform_3, window_bounds = array<i64: 128, 128>}]} {
    %c0 = arith.constant 0 : index
    %c0_0 = arith.constant 0 : index
    %0 = vector.load %arg1[%c0, %c0_0] : memref<128x128xbf16, #tpu.memory_space<vmem>>, vector<128x128xbf16>
    %c0_1 = arith.constant 0 : index
    %c0_2 = arith.constant 0 : index
    %1 = vector.load %arg2[%c0_1, %c0_2] : memref<128x128xbf16, #tpu.memory_space<vmem>>, vector<128x128xbf16>
    %cst = arith.constant dense<0.000000e+00> : vector<128x128xf32>
    %2 = tpu.matmul %0, %1, %cst {dimension_numbers = #tpu.dot_dimension_numbers<[1], [0], [0], [1], [0, 0, 1, 1], [], []>} : vector<128x128xbf16>, vector<128x128xbf16>, vector<128x128xf32> -> vector<128x128xf32>
    %c0_3 = arith.constant 0 : index
    %c0_4 = arith.constant 0 : index
    %3 = vector.load %arg3[%c0_3, %c0_4] : memref<1x128xf32, #tpu.memory_space<vmem>>, vector<1x128xf32>
    %4 = vector.broadcast %3 : vector<1x128xf32> to vector<128x128xf32>
    %5 = arith.addf %2, %4 : vector<128x128xf32>
    %cst_5 = arith.constant 0.000000e+00 : f32
    %6 = vector.broadcast %cst_5 : f32 to vector<128x128xf32>
    %7 = arith.maximumf %5, %6 : vector<128x128xf32>
    %8 = arith.truncf %7 : vector<128x128xf32> to vector<128x128xbf16>
    %c0_6 = arith.constant 0 : index
    %c0_7 = arith.constant 0 : index
    %9 = vector.load %arg4[%c0_6, %c0_7] : memref<128x128xbf16, #tpu.memory_space<vmem>>, vector<128x128xbf16>
    tpu.vector_store %arg4[%c0_6, %c0_7], %8 {strides = array<i32>} : memref<128x128xbf16, #tpu.memory_space<vmem>>, vector<128x128xbf16>,
    return
  }
  func.func @transform_0(%arg0: i32) -> (i32, i32) {
    %c0_i32 = arith.constant 0 : i32
    %c0_i32_0 = arith.constant 0 : i32
    return %arg0, %c0_i32 : i32, i32
  }
  func.func @transform_1(%arg0: i32) -> (i32, i32) {
    %c0_i32 = arith.constant 0 : i32
    %c0_i32_0 = arith.constant 0 : i32
    %c0_i32_1 = arith.constant 0 : i32
    return %c0_i32, %c0_i32_0 : i32, i32
  }
  func.func @transform_2(%arg0: i32) -> (i32, i32) {
    %c0_i32 = arith.constant 0 : i32
    %c0_i32_0 = arith.constant 0 : i32
    %c0_i32_1 = arith.constant 0 : i32
    return %c0_i32, %c0_i32_0 : i32, i32
  }
  func.func @transform_3(%arg0: i32) -> (i32, i32) {
    %c0_i32 = arith.constant 0 : i32
    %c0_i32_0 = arith.constant 0 : i32
    return %arg0, %c0_i32 : i32, i32
  }
}

</mosaic_0001>

<bundles_post_ra>
// kernel: tpu_custom_call.1
= control target key start
LH: loop header
LB: loop body
LE: loop exit
PB: predicated region body
PF: predicated region fallthrough
CT: control target
= control target key end

     0   :  { %8 = vsyncpa [#allocation3], 0  ;;  %s683_s0 = inlined_call_operand.hbm [shape: bf16[128,128], index: 0, kind: input, shape index: {}]   ;;  %s684_s1 = inlined_call_operand.hbm [shape: bf16[128,128], index: 1, kind: input, shape index: {}]   ;;  %s685_s2 = inlined_call_operand.vmem [shape: f32[1,128], index: 2, kind: input, shape index: {}]   ;;  %s686_s3 = inlined_call_operand.hbm [shape: bf16[128,128], index: 3, kind: output, shape index: {}]  }
   0x1   :  { %9 = vsyncpa [#allocation6], 0 }
   0x2   :  { %10 = vsyncpa [#allocation4], 0  ;;  %s637_s12 = smov [#allocation2]  }
   0x3   :  { %s16_s13 = sshll.u32 %s637_s12, 4  ;;  %s17_s13 = int_to_ptr.vmem [resolvable:$true] %s16_s13 }
   0x4   :  { %s579_s14 = scalar_lea.vmem %s17_s13, 1024  ;;  %p584_p1 = scmp.lt.s32.totalorder %s17_s13, %s17_s13 }
   0x5   :  { %p580_p0 = scmp.ne.s32.totalorder %s17_s13, %s579_s14  ;;  %p585_p2 = scmp.lt.s32.totalorder %s579_s14, %s579_s14 }
   0x7   :  { %p586_p3 = por %p585_p2, %p584_p1 }
   0x9   :  { %p587_p4 = pnand %p586_p3, %p580_p0 }
   0xb   :  { %590 = shalt.err (!%p587_p4)
}
   0xc   :  { %s638_s15 = smov 64   ;;  %s639_s16 = smov 4  }
   0xd   :  { %22 = dma.hbm_to_vmem [thread:$0]  %s683_s0, 1024, %s17_s13, [#allocation3], %s638_s15, %s638_s15, %s639_s16  }
   0xe   :  { %s640_s19 = smov [#allocation5]  }
   0xf   :  { %s28_s20 = sshll.u32 %s640_s19, 4  ;;  %s29_s20 = int_to_ptr.vmem [resolvable:$true] %s28_s20 }
  0x10   :  { %s599_s21 = scalar_lea.vmem %s29_s20, 1024  ;;  %p604_p6 = scmp.lt.s32.totalorder %s29_s20, %s29_s20 }
  0x11   :  { %p600_p5 = scmp.ne.s32.totalorder %s29_s20, %s599_s21  ;;  %p605_p7 = scmp.lt.s32.totalorder %s599_s21, %s599_s21 }
  0x13   :  { %p606_p8 = por %p605_p7, %p604_p6 }
  0x15   :  { %p607_p9 = pnand %p606_p8, %p600_p5 }
  0x17   :  { %610 = shalt.err (!%p607_p9)
}
  0x18   :  { %34 = dma.hbm_to_vmem [thread:$0]  %s684_s1, 1024, %s29_s20, [#allocation6], %s638_s15, %s638_s15, %s639_s16  }
  0x19   :  { %631 = dma.done.wait [#allocation3], 1024  }
  0x1a   :  { %632 = vsyncadd [#allocation3], 4294966272 }
  0x1b   :  { %633 = dma.done.wait [#allocation6], 1024  }
  0x1c   :  { %634 = vsyncadd [#allocation6], 4294966272  ;;  %v555_v0 = vld [vmem:[#allocation5 + $0x38] sm:$0xff]   ;;  %v556_v1 = vld [vmem:[#allocation5 + $0x30] sm:$0xff]  }
  0x1d   :  { %502 = vmatprep.subr.bf16.mxu0 %v555_v0  ;;  %534 = vmatprep.subr.bf16.mxu1 %v555_v0  ;;  %v557_v2 = vld [vmem:[#allocation5 + $0x28] sm:$0xff]   ;;  %v558_v3 = vld [vmem:[#allocation5 + $0x20] sm:$0xff]   ;;  %v559_v6 = vld [vmem:[#allocation5 + $0x18] sm:$0xff]  }
  0x1e   :  { %503 = vmatpush3.bf16.msra.mxu0 %v555_v0  ;;  %542 = vmatpush3.bf16.msra.mxu1 %v555_v0  ;;  %v563_v4 = vld [vmem:[#allocation2] sm:$0xff]   ;;  %v560_v7 = vld [vmem:[#allocation5 + $0x10] sm:$0xff]   ;;  %v561_v8 = vld [vmem:[#allocation5 + $0x8] sm:$0xff]  }
  0x1f   :  { %504 = vmatprep.subr.bf16.mxu0 %v556_v1  ;;  %535 = vmatprep.subr.bf16.mxu1 %v556_v1  ;;  %v564_v5 = vld [vmem:[#allocation2 + $0x20] sm:$0xff]   ;;  %v565_v10 = vld [vmem:[#allocation2 + $0x8] sm:$0xff]   ;;  %v567_v12 = vld [vmem:[#allocation2 + $0x10] sm:$0xff]  }
  0x20   :  { %518 = vmatprep.mubr.bf16.mxu0 %v563_v4  ;;  %526 = vmatprep.mubr.bf16.mxu1 %v564_v5  ;;  %v562_v9 = vld [vmem:[#allocation5] sm:$0xff]   ;;  %v566_v11 = vld [vmem:[#allocation2 + $0x28] sm:$0xff]   ;;  %v568_v13 = vld [vmem:[#allocation2 + $0x30] sm:$0xff]  }
  0x21   :  { %v569_v14 = vld [vmem:[#allocation2 + $0x18] sm:$0xff]   ;;  %v390_v16 = vld [vmem:[%s685_s2] ss:$0 sm:$0xff]  ;;  %s641_s2 = smov [#allocation7]  }
  0x22   :  { %505 = vmatpush3.bf16.msra.mxu0 %v556_v1  ;;  %543 = vmatpush3.bf16.msra.mxu1 %v556_v1  ;;  %v570_v15 = vld [vmem:[#allocation2 + $0x38] sm:$0xff]   ;;  %s377_s24 = sshll.u32 %s641_s2, 4  ;;  %s378_s24 = int_to_ptr.vmem [resolvable:$true] %s377_s24 }
  0x23   :  { %506 = vmatprep.subr.bf16.mxu0 %v557_v2  ;;  %536 = vmatprep.subr.bf16.mxu1 %v557_v2  ;;  %s611_s25 = scalar_lea.vmem %s378_s24, 1024  ;;  %p616_p11 = scmp.lt.s32.totalorder %s378_s24, %s378_s24 }
  0x24   :  { %p612_p10 = scmp.ne.s32.totalorder %s378_s24, %s611_s25  ;;  %p617_p12 = scmp.lt.s32.totalorder %s611_s25, %s611_s25 }
  0x26   :  { %507 = vmatpush3.bf16.msra.mxu0 %v557_v2  ;;  %544 = vmatpush3.bf16.msra.mxu1 %v557_v2  ;;  %p618_p13 = por %p617_p12, %p616_p11 }
  0x27   :  { %508 = vmatprep.subr.bf16.mxu0 %v558_v3  ;;  %537 = vmatprep.subr.bf16.mxu1 %v558_v3 }
  0x28   :  { %p619_p0 = pnand %p618_p13, %p612_p10 }
  0x2a   :  { %509 = vmatpush3.bf16.msra.mxu0 %v558_v3  ;;  %545 = vmatpush3.bf16.msra.mxu1 %v558_v3 }
  0x2b   :  { %510 = vmatprep.subr.bf16.mxu0 %v559_v6  ;;  %538 = vmatprep.subr.bf16.mxu1 %v559_v6 }
  0x2e   :  { %511 = vmatpush3.bf16.msra.mxu0 %v559_v6  ;;  %546 = vmatpush3.bf16.msra.mxu1 %v559_v6 }
  0x2f   :  { %512 = vmatprep.subr.bf16.mxu0 %v560_v7  ;;  %539 = vmatprep.subr.bf16.mxu1 %v560_v7 }
  0x32   :  { %513 = vmatpush3.bf16.msra.mxu0 %v560_v7  ;;  %547 = vmatpush3.bf16.msra.mxu1 %v560_v7 }
  0x33   :  { %514 = vmatprep.subr.bf16.mxu0 %v561_v8  ;;  %540 = vmatprep.subr.bf16.mxu1 %v561_v8 }
  0x36   :  { %515 = vmatpush3.bf16.msra.mxu0 %v561_v8  ;;  %548 = vmatpush3.bf16.msra.mxu1 %v561_v8 }
  0x37   :  { %516 = vmatprep.subr.bf16.mxu0 %v562_v9  ;;  %541 = vmatprep.subr.bf16.mxu1 %v562_v9 }
  0x3a   :  { %517 = vmatpush3.bf16.msra.mxu0 %v562_v9  ;;  %549 = vmatpush3.bf16.msra.mxu1 %v562_v9 }
  0x3d   :  { %519 = vmatmul.mubr.bf16.vlgmr.msra.gmra.mxu0 %v565_v10  ;;  %527 = vmatmul.mubr.bf16.vlgmr.msra.gmra.mxu1 %v566_v11 }
  0x3e   :  { %522 = vmatprep.mubr.bf16.mxu0 %v567_v12  ;;  %530 = vmatprep.mubr.bf16.mxu1 %v568_v13 }
  0x45   :  { %523 = vmatmul.mubr.bf16.gmra.mxu0 %v569_v14  ;;  %531 = vmatmul.mubr.bf16.gmra.mxu1 %v570_v15 }
  0xfd   :  { %v520_v17 = vpop.f32.mrf.mxu0  ;;  %v528_v18 = vpop.f32.mrf.mxu1 }
  0xfe   :  { %v222_v19 = vadd.f32 %v520_v17, %v390_v16  ;;  %v254_v20 = vadd.f32 %v528_v18, %v390_v16 }
  0xff   :  { %v213_v21 = vpop.f32.mrf.mxu0  ;;  %v245_v22 = vpop.f32.mrf.mxu1 }
 0x100   :  { %v214_v23 = vadd.f32 %v390_v16, %v213_v21  ;;  %v246_v24 = vadd.f32 %v390_v16, %v245_v22  ;;  %v278_v29 = vmax.f32 %v222_v19, 0.0  ;;  %v286_v30 = vmax.f32 %v254_v20, 0.0 }
 0x101   :  { %v521_v25 = vpop.f32.mrf.mxu0  ;;  %v529_v26 = vpop.f32.mrf.mxu1 }
 0x102   :  { %v225_v27 = vadd.f32 %v521_v25, %v390_v16  ;;  %v257_v28 = vadd.f32 %v529_v26, %v390_v16  ;;  %v276_v37 = vmax.f32 %v214_v23, 0.0  ;;  %v284_v38 = vmax.f32 %v246_v24, 0.0 }
 0x103   :  { %v216_v31 = vpop.f32.mrf.mxu0  ;;  %v248_v32 = vpop.f32.mrf.mxu1 }
 0x104   :  { %v279_v33 = vmax.f32 %v225_v27, 0.0  ;;  %v287_v34 = vmax.f32 %v257_v28, 0.0  ;;  %v217_v35 = vadd.f32 %v390_v16, %v216_v31  ;;  %v249_v36 = vadd.f32 %v390_v16, %v248_v32 }
 0x105   :  { %v524_v39 = vpop.f32.mrf.mxu0  ;;  %v532_v40 = vpop.f32.mrf.mxu1 }
 0x106   :  { %v447_v41 = vpack.c.bf16 %v279_v33, %v278_v29  ;;  %v467_v42 = vpack.c.bf16 %v287_v34, %v286_v30  ;;  %v277_v43 = vmax.f32 %v217_v35, 0.0  ;;  %v285_v44 = vmax.f32 %v249_v36, 0.0 }
 0x107   :  { %v238_v45 = vadd.f32 %v524_v39, %v390_v16  ;;  %v270_v46 = vadd.f32 %v532_v40, %v390_v16  ;;  %v229_v47 = vpop.f32.mrf.mxu0  ;;  %v261_v48 = vpop.f32.mrf.mxu1 }
 0x108   :  { %479 = vst [vmem:[#allocation7 + $0x8] sm:$0xff] %v447_v41   ;;  %483 = vst [vmem:[#allocation7 + $0x28] sm:$0xff] %v467_v42   ;;  %v442_v49 = vpack.c.bf16 %v277_v43, %v276_v37  ;;  %v462_v50 = vpack.c.bf16 %v285_v44, %v284_v38  ;;  %v230_v51 = vadd.f32 %v390_v16, %v229_v47 }
 0x109   :  { %v262_v52 = vadd.f32 %v390_v16, %v261_v48  ;;  %v525_v53 = vpop.f32.mrf.mxu0  ;;  %v533_v54 = vpop.f32.mrf.mxu1  ;;  %v282_v57 = vmax.f32 %v238_v45, 0.0  ;;  %v290_v58 = vmax.f32 %v270_v46, 0.0 }
 0x10a   :  { %443 = vst [vmem:[#allocation7] sm:$0xff] %v442_v49   ;;  %482 = vst [vmem:[#allocation7 + $0x20] sm:$0xff] %v462_v50   ;;  %v241_v55 = vadd.f32 %v525_v53, %v390_v16  ;;  %v273_v56 = vadd.f32 %v533_v54, %v390_v16  ;;  %v280_v1 = vmax.f32 %v230_v51, 0.0 }
 0x10b   :  { %v232_v59 = vpop.f32.mrf.mxu0  ;;  %v264_v60 = vpop.f32.mrf.mxu1  ;;  %v288_v2 = vmax.f32 %v262_v52, 0.0 }
 0x10c   :  { %v283_v61 = vmax.f32 %v241_v55, 0.0  ;;  %v291_v62 = vmax.f32 %v273_v56, 0.0  ;;  %v233_v63 = vadd.f32 %v390_v16, %v232_v59  ;;  %v265_v0 = vadd.f32 %v390_v16, %v264_v60 }
 0x10e   :  { %v457_v3 = vpack.c.bf16 %v283_v61, %v282_v57  ;;  %v477_v4 = vpack.c.bf16 %v291_v62, %v290_v58  ;;  %v281_v5 = vmax.f32 %v233_v63, 0.0  ;;  %v289_v6 = vmax.f32 %v265_v0, 0.0 }
 0x110   :  { %481 = vst [vmem:[#allocation7 + $0x18] sm:$0xff] %v457_v3   ;;  %485 = vst [vmem:[#allocation7 + $0x38] sm:$0xff] %v477_v4   ;;  %v452_v7 = vpack.c.bf16 %v281_v5, %v280_v1  ;;  %v472_v8 = vpack.c.bf16 %v289_v6, %v288_v2 }
 0x112   :  { %480 = vst [vmem:[#allocation7 + $0x10] sm:$0xff] %v452_v7   ;;  %484 = vst [vmem:[#allocation7 + $0x30] sm:$0xff] %v472_v8  }
 0x113   :  { %622 = shalt.err (!%p619_p0)
}
 0x114   :  { %383 = dma.vmem_to_hbm [thread:$0]  %s378_s24, 1024, %s686_s3, [#allocation4], %s638_s15, %s638_s15, %s639_s16  }
 0x115   :  { %635 = dma.done.wait [#allocation4], 1024  }
 0x116   :  { %636 = vsyncadd [#allocation4], 4294966272 }
 0x117   :  { %387 = vsyncpa [#allocation3], 1 }
 0x118   :  { %388 = vsyncpa [#allocation6], 1 }
 0x119   :  { %389 = vsyncpa [#allocation4], 1 }

</bundles_post_ra>
